<compile_context>
chip_gen: v5e
topology: v5e:2x2
jax: 0.10.0
libtpu: 0.0.40
codegen_flags: <defaults>
</compile_context>

<pallas_src>
import functools

import jax
import jax.numpy as jnp
from jax import lax
from jax.experimental import pallas as pl
from jax.experimental.pallas import tpu as pltpu

EPS = 1e-15
LANE = 128            # feature dims padded to lane width
ROW_ALIGN = 16        # row dims padded to the bf16 sublane tile
MAX_ROW_TILE = 128    # row tile (small enough for v7x's 64 MiB VMEM)
KC = 8                # K sub-chunk in the interval kernel (bounds temporaries)
_RESIDENT_BYTES = 2 * 1024 * 1024   # keep whole weight in VMEM if this small


# --------------------------------------------------------------------------
# helpers
# --------------------------------------------------------------------------
def _round_up(x, m):
    return ((x + m - 1) // m) * m


def _tiles(n):
    """(padded_rows, row_tile): full-extent tile when small, 128-tiles when big."""
    n16 = _round_up(max(n, 1), ROW_ALIGN)
    if n16 <= MAX_ROW_TILE:
        return n16, n16
    return _round_up(n, MAX_ROW_TILE), MAX_ROW_TILE


def _pad2(a, rows, cols):
    return jnp.pad(a, ((0, rows - a.shape[0]), (0, cols - a.shape[1])))


def _cparams(n_axes):
    sem = ("parallel",) + ("arbitrary",) * (n_axes - 1)
    return pltpu.CompilerParams(dimension_semantics=sem,
                                vmem_limit_bytes=32 * 1024 * 1024)


def _weight_spec(k_dim, m):
    """Small weights: whole-array block with a constant index_map so Pallas
    keeps them VMEM-resident across row tiles (the kernel slices the current
    128-wide K slab itself).  Large weights fall back to streamed K blocks."""
    if k_dim * m * 4 <= _RESIDENT_BYTES:
        return pl.BlockSpec((k_dim, m), lambda i, k: (0, 0)), True
    return pl.BlockSpec((LANE, m), lambda i, k: (k, 0)), False


# --------------------------------------------------------------------------
# Pallas kernels
# --------------------------------------------------------------------------
def _fuzzify_kernel(x_ref, cs_ref, iv_ref, o_ref, *, n_rules):
    """TSK_input_fuzzifier.fuzzify: o = x * max_r exp(-(x - Cs[r])^2 * inv_den[r]).
    inv_den = 1/(2*Vs^2+eps) is precomputed in the wrapper (no in-kernel div)."""
    x = x_ref[...]
    cs = cs_ref[...]
    iv = iv_ref[...]
    w = None
    for r in range(n_rules):                     # static unroll over few rules
        d = x - cs[r:r + 1, :]
        v = jnp.exp(-(d * d) * iv[r:r + 1, :])
        w = v if w is None else jnp.maximum(w, v)
    o_ref[...] = x * w


def _matmul_kernel(a_ref, b_ref, o_ref, acc_ref, *, trans_a):
    """o = A @ B (or A^T @ B).  K streamed on the last grid axis with an f32
    accumulator.  A (the incidence matrix) may arrive as bf16 (exact for
    counts <= 256) and is widened in VMEM."""
    @pl.when(pl.program_id(1) == 0)
    def _():
        acc_ref[...] = jnp.zeros_like(acc_ref)

    a = a_ref[...].astype(jnp.float32)
    b = b_ref[...]
    if trans_a:
        prod = lax.dot_general(a, b, (((0,), (0,)), ((), ())),
                               preferred_element_type=jnp.float32)
    else:
        prod = jnp.dot(a, b, preferred_element_type=jnp.float32)
    acc = acc_ref[...] + prod
    acc_ref[...] = acc

    @pl.when(pl.program_id(1) == pl.num_programs(1) - 1)
    def _():
        o_ref[...] = acc


def _crisp_linear_kernel(xv_ref, wb_ref, wa_ref, wc_ref, bl_ref, br_ref,
                         hl_ref, hr_ref, accl_ref, accr_ref, *, resident):
    """CrispToFuzzyConv linear head (all three contractions on the MXU):
       hl = Xv@wb - |Xv|@wa + (bb-ba),   hr = Xv@wb + |Xv|@wc + (bb+bc)."""
    @pl.when(pl.program_id(1) == 0)
    def _():
        accl_ref[...] = jnp.zeros_like(accl_ref)
        accr_ref[...] = jnp.zeros_like(accr_ref)

    if resident:
        ks = pl.multiple_of(pl.program_id(1) * LANE, LANE)
        wb = wb_ref[pl.ds(ks, LANE), :]
        wa = wa_ref[pl.ds(ks, LANE), :]
        wc = wc_ref[pl.ds(ks, LANE), :]
    else:
        wb, wa, wc = wb_ref[...], wa_ref[...], wc_ref[...]

    xv = xv_ref[...]
    xa = jnp.abs(xv)
    center = jnp.dot(xv, wb, preferred_element_type=jnp.float32)
    new_l = accl_ref[...] + (center - jnp.dot(xa, wa,
                                              preferred_element_type=jnp.float32))
    new_r = accr_ref[...] + (center + jnp.dot(xa, wc,
                                              preferred_element_type=jnp.float32))
    accl_ref[...] = new_l
    accr_ref[...] = new_r

    @pl.when(pl.program_id(1) == pl.num_programs(1) - 1)
    def _():
        hl_ref[...] = new_l + bl_ref[...]
        hr_ref[...] = new_r + br_ref[...]


def _interval_mlp_kernel(al_ref, ar_ref, wl_ref, wr_ref, bl_ref, br_ref,
                         ol_ref, or_ref, accl_ref, accr_ref, *, resident):
    """FuzzyMLP.interval_prod, K-blocked:
       out_l[n,j] = sum_k min(al*wl, al*wr, ar*wl, ar*wr) + b_l  (out_r: max).
    K is streamed in 128-wide slabs on the grid and processed in 8-wide
    sub-chunks, so only [tile_N, 8, M] temporaries ever exist (never the full
    [N, K, M] corner tensor of the original formulation).
    # TODO(synk): the sign-definite portion of this contraction could ride the
    # MXU via +/- splits of (al, ar) and sign-masked weights; the straddling
    # interval x straddling weight corner max is not bilinear, so an exact
    # full-MXU path needs an element-wise correction and is left out here.
    """
    @pl.when(pl.program_id(1) == 0)
    def _():
        accl_ref[...] = jnp.zeros_like(accl_ref)
        accr_ref[...] = jnp.zeros_like(accr_ref)

    if resident:
        ks = pl.multiple_of(pl.program_id(1) * LANE, LANE)
        wl = wl_ref[pl.ds(ks, LANE), :]
        wr = wr_ref[pl.ds(ks, LANE), :]
    else:
        wl, wr = wl_ref[...], wr_ref[...]

    al = al_ref[...]
    ar = ar_ref[...]
    sl = accl_ref[...]
    sr = accr_ref[...]
    for c in range(LANE // KC):                  # static: 16 sub-chunks of 8
        lo, hi = c * KC, (c + 1) * KC
        a_l = al[:, lo:hi]
        a_r = ar[:, lo:hi]
        w_l = wl[lo:hi, :]
        w_r = wr[lo:hi, :]
        p1 = a_l[:, :, None] * w_l[None, :, :]
        p2 = a_l[:, :, None] * w_r[None, :, :]
        p3 = a_r[:, :, None] * w_l[None, :, :]
        p4 = a_r[:, :, None] * w_r[None, :, :]
        sl = sl + jnp.sum(jnp.minimum(jnp.minimum(p1, p2),
                                      jnp.minimum(p3, p4)), axis=1)
        sr = sr + jnp.sum(jnp.maximum(jnp.maximum(p1, p2),
                                      jnp.maximum(p3, p4)), axis=1)
    accl_ref[...] = sl
    accr_ref[...] = sr

    @pl.when(pl.program_id(1) == pl.num_programs(1) - 1)
    def _():
        ol_ref[...] = sl + bl_ref[...]
        or_ref[...] = sr + br_ref[...]


def _defuzz_kernel(hl_ref, hr_ref, c_ref, o_ref):
    """update_center: o = hl + clamp(center, 0, 1) * (hr - hl)."""
    c = jnp.clip(c_ref[...], 0.0, 1.0)
    hl = hl_ref[...]
    o_ref[...] = hl + c * (hr_ref[...] - hl)


# --------------------------------------------------------------------------
# pallas_call wrappers (BlockSpecs / grids)
# --------------------------------------------------------------------------
def _fuzzify(x_p, cs, iv, n_rules, tn):
    n_p, f_p = x_p.shape
    blk = pl.BlockSpec((tn, f_p), lambda i: (i, 0))
    return pl.pallas_call(
        functools.partial(_fuzzify_kernel, n_rules=n_rules),
        out_shape=jax.ShapeDtypeStruct((n_p, f_p), jnp.float32),
        grid=(n_p // tn,),
        in_specs=[blk,
                  pl.BlockSpec(cs.shape, lambda i: (0, 0)),
                  pl.BlockSpec(iv.shape, lambda i: (0, 0))],
        out_specs=blk,
        compiler_params=_cparams(1),
    )(x_p, cs, iv)


def _matmul(a, x, trans_a, tm, tk):
    """A @ X (trans_a=False) or A^T @ X (trans_a=True); X full-width so the
    output is lane-dense; contraction streamed on the last grid axis."""
    if trans_a:
        k_dim, m_dim = a.shape
        a_spec = pl.BlockSpec((tk, tm), lambda i, k: (k, i))
    else:
        m_dim, k_dim = a.shape
        a_spec = pl.BlockSpec((tm, tk), lambda i, k: (i, k))
    w = x.shape[1]
    return pl.pallas_call(
        functools.partial(_matmul_kernel, trans_a=trans_a),
        out_shape=jax.ShapeDtypeStruct((m_dim, w), jnp.float32),
        grid=(m_dim // tm, k_dim // tk),
        in_specs=[a_spec, pl.BlockSpec((tk, w), lambda i, k: (k, 0))],
        out_specs=pl.BlockSpec((tm, w), lambda i, k: (i, 0)),
        scratch_shapes=[pltpu.VMEM((tm, w), jnp.float32)],
        compiler_params=_cparams(2),
    )(a, x)


def _crisp_linear(xv, wb, wa, wc, bl, br, tn):
    n_p, k_dim = xv.shape
    m = wb.shape[1]
    w_spec, resident = _weight_spec(k_dim, m)
    b_spec = pl.BlockSpec((1, m), lambda i, k: (0, 0))
    o_spec = pl.BlockSpec((tn, m), lambda i, k: (i, 0))
    return pl.pallas_call(
        functools.partial(_crisp_linear_kernel, resident=resident),
        out_shape=(jax.ShapeDtypeStruct((n_p, m), jnp.float32),
                   jax.ShapeDtypeStruct((n_p, m), jnp.float32)),
        grid=(n_p // tn, k_dim // LANE),
        in_specs=[pl.BlockSpec((tn, LANE), lambda i, k: (i, k)),
                  w_spec, w_spec, w_spec, b_spec, b_spec],
        out_specs=(o_spec, o_spec),
        scratch_shapes=[pltpu.VMEM((tn, m), jnp.float32),
                        pltpu.VMEM((tn, m), jnp.float32)],
        compiler_params=_cparams(2),
    )(xv, wb, wa, wc, bl, br)


def _interval_mlp(al, ar, wl, wr, bl, br, tn):
    n_p, k_dim = al.shape
    m = wl.shape[1]
    d_spec = pl.BlockSpec((tn, LANE), lambda i, k: (i, k))
    w_spec, resident = _weight_spec(k_dim, m)
    b_spec = pl.BlockSpec((1, m), lambda i, k: (0, 0))
    o_spec = pl.BlockSpec((tn, m), lambda i, k: (i, 0))
    return pl.pallas_call(
        functools.partial(_interval_mlp_kernel, resident=resident),
        out_shape=(jax.ShapeDtypeStruct((n_p, m), jnp.float32),
                   jax.ShapeDtypeStruct((n_p, m), jnp.float32)),
        grid=(n_p // tn, k_dim // LANE),
        in_specs=[d_spec, d_spec, w_spec, w_spec, b_spec, b_spec],
        out_specs=(o_spec, o_spec),
        scratch_shapes=[pltpu.VMEM((tn, m), jnp.float32),
                        pltpu.VMEM((tn, m), jnp.float32)],
        compiler_params=_cparams(2),
    )(al, ar, wl, wr, bl, br)


def _defuzz(hl, hr, center, tn):
    n_p, m = hl.shape
    blk = pl.BlockSpec((tn, m), lambda i: (i, 0))
    return pl.pallas_call(
        _defuzz_kernel,
        out_shape=jax.ShapeDtypeStruct((n_p, m), jnp.float32),
        grid=(n_p // tn,),
        in_specs=[blk, blk, blk],
        out_specs=blk,
        compiler_params=_cparams(1),
    )(hl, hr, center)


# --------------------------------------------------------------------------
# Forward pass
# --------------------------------------------------------------------------
def fhrli_forward(params, x, V, E, num_edges, nlayer):
    """FHRLI_EquivSetGNN_PF.forward (inference)."""
    f32 = jnp.float32
    relu = lambda v: jnp.maximum(v, 0.0)

    n, f = x.shape
    h = params["f1_wb"].shape[1]          # MLP_hidden
    c = params["w1_b"].shape[1]           # num_classes (== MLP_hidden)
    r = params["Cs"].shape[1]             # n_rules

    n_p, tn = _tiles(n)
    e_p, te = _tiles(num_edges)
    f_p = _round_up(f, LANE)
    h_p = _round_up(h, LANE)
    c_p = _round_up(c, LANE)

    # ---- glue: incidence matrix, degrees, preprocessed + padded weights ----
    b_inc = jnp.zeros((e_p, n_p), f32).at[E, V].add(1.0)
    if float(jnp.max(b_inc)) <= 256.0:    # bf16 is exact for counts <= 256
        b_inc = b_inc.astype(jnp.bfloat16)
    deg = jnp.zeros((n_p, 1), f32).at[V].add(1.0)

    # fuzzifier params, rule-major; reciprocal precomputed (no in-kernel div)
    r_pad = _round_up(r, 8)
    cs = _pad2(params["Cs"].T, r_pad, f_p)
    iv = _pad2(1.0 / (2.0 * params["Vs"].T ** 2 + EPS), r_pad, f_p)

    def _split_pad(w, top_rows, top_pad, bot_pad, cols_pad):
        # split the 2*in_features rows into the two concat halves, pad each.
        return jnp.concatenate([_pad2(w[:top_rows], top_pad, cols_pad),
                                _pad2(w[top_rows:], bot_pad, cols_pad)], axis=0)

    # CrispToFuzzyConv
    f1_wb = _split_pad(params["f1_wb"], f, f_p, f_p, h_p)
    f1_wa = _split_pad(params["f1_wa"], f, f_p, f_p, h_p)
    f1_wc = _split_pad(params["f1_wc"], f, f_p, f_p, h_p)
    f1_bl = _pad2(params["f1_bb"] - params["f1_ba"], 1, h_p)
    f1_br = _pad2(params["f1_bb"] + params["f1_bc"], 1, h_p)

    # FuzzyMLP W1 (H -> C): interval weights hoisted out of the kernels
    w1_l = _pad2(params["w1_b"] - relu(params["w1_a"]), h_p, c_p)
    w1_r = _pad2(params["w1_b"] + relu(params["w1_c"]), h_p, c_p)
    b1_l = _pad2(params["b1_b"] - relu(params["b1_a"]), 1, c_p)
    b1_r = _pad2(params["b1_b"] + relu(params["b1_c"]), 1, c_p)

    # FuzzyMLP W (2H -> C): top half acts on h, bottom half on the edge agg
    wW_l = _split_pad(params["wW_b"] - relu(params["wW_a"]), h, h_p, c_p, c_p)
    wW_r = _split_pad(params["wW_b"] + relu(params["wW_c"]), h, h_p, c_p, c_p)
    bW_l = _pad2(params["bW_b"] - relu(params["bW_a"]), 1, c_p)
    bW_r = _pad2(params["bW_b"] + relu(params["bW_c"]), 1, c_p)

    center = _pad2(params["center"], n_p, c_p)
    x_p = _pad2(x.astype(f32), n_p, f_p)

    # ---- 1) input fuzzifier (dropout is identity at inference) -------------
    x_fz = _fuzzify(x_p, cs, iv, r, tn)

    # ---- 2) CrispToFuzzyConv ------------------------------------------------
    xe = _matmul(b_inc, x_fz, False, te, tn)          # edge scatter-add
    xv2 = _matmul(b_inc, xe, True, tn, te)            # gather + vertex add
    xv = jnp.concatenate([deg * x_fz, xv2], axis=1)   # [Np, 2Fp]
    hl, hr = _crisp_linear(xv, f1_wb, f1_wa, f1_wc, f1_bl, f1_br, tn)

    # ---- 3) FuzzyEquivSetConv layers ----------------------------------------
    for _ in range(nlayer):
        xl, xr = _interval_mlp(hl, hr, w1_l, w1_r, b1_l, b1_r, tn)   # W1
        x2 = jnp.concatenate([xl, xr], axis=1)                       # [Np, 2Cp]
        xe2 = _matmul(b_inc, x2, False, te, tn)                      # [Ep, 2Cp]
        g2 = _matmul(b_inc, xe2, True, tn, te)                       # [Np, 2Cp]
        a_l = jnp.concatenate([deg * hl, g2[:, :c_p]], axis=1)       # [Np, Hp+Cp]
        a_r = jnp.concatenate([deg * hr, g2[:, c_p:]], axis=1)
        hl, hr = _interval_mlp(a_l, a_r, wW_l, wW_r, bW_l, bW_r, tn)  # W

    # ---- 4) defuzzification (update_center) ---------------------------------
    out = _defuzz(hl, hr, center, tn)
    return out[:n, :c]


# --------------------------------------------------------------------------
# Pure-JAX reference (original scatter semantics via segment_sum)
# --------------------------------------------------------------------------
def reference_forward(params, x, V, E, num_edges, nlayer):
    relu = lambda v: jnp.maximum(v, 0.0)
    N, _ = x.shape

    d = x[:, :, None] - params["Cs"][None]
    fz = jnp.exp(-(d * d) / (2.0 * params["Vs"] ** 2 + EPS)[None])
    x_fz = x * fz.max(axis=2)

    Xve = x_fz[V]
    Xe = jax.ops.segment_sum(Xve, E, num_segments=num_edges)
    Xev = jnp.concatenate([x_fz[V], Xe[E]], -1)
    Xv = jax.ops.segment_sum(Xev, V, num_segments=N)
    center = Xv @ params["f1_wb"] + params["f1_bb"]
    sl = jnp.abs(Xv) @ params["f1_wa"] + params["f1_ba"]
    sr = jnp.abs(Xv) @ params["f1_wc"] + params["f1_bc"]
    hl, hr = center - sl, center + sr

    def iprod(al, ar, bl, br):
        p1 = al[:, :, None] * bl[None]
        p2 = al[:, :, None] * br[None]
        p3 = ar[:, :, None] * bl[None]
        p4 = ar[:, :, None] * br[None]
        pmin = jnp.minimum(jnp.minimum(p1, p2), jnp.minimum(p3, p4))
        pmax = jnp.maximum(jnp.maximum(p1, p2), jnp.maximum(p3, p4))
        return pmin.sum(1), pmax.sum(1)

    for _ in range(nlayer):
        wl1 = params["w1_b"] - relu(params["w1_a"])
        wr1 = params["w1_b"] + relu(params["w1_c"])
        bl1 = params["b1_b"] - relu(params["b1_a"])
        br1 = params["b1_b"] + relu(params["b1_c"])
        xl, xr = iprod(hl, hr, wl1, wr1)
        xl, xr = xl + bl1, xr + br1
        Xe_l = jax.ops.segment_sum(xl[V], E, num_segments=num_edges)
        Xe_r = jax.ops.segment_sum(xr[V], E, num_segments=num_edges)
        Xv_l = jax.ops.segment_sum(jnp.concatenate([hl[V], Xe_l[E]], -1), V, num_segments=N)
        Xv_r = jax.ops.segment_sum(jnp.concatenate([hr[V], Xe_r[E]], -1), V, num_segments=N)
        wl = params["wW_b"] - relu(params["wW_a"])
        wr = params["wW_b"] + relu(params["wW_c"])
        bl = params["bW_b"] - relu(params["bW_a"])
        br = params["bW_b"] + relu(params["bW_c"])
        hl, hr = iprod(Xv_l, Xv_r, wl, wr)
        hl, hr = hl + bl, hr + br

    c = jnp.clip(params["center"], 0.0, 1.0)
    return hl + c * (hr - hl)


# --------------------------------------------------------------------------
if __name__ == "__main__":
    # Small shapes consistent with the module.  num_classes must equal
    # MLP_hidden for FuzzyEquivSetConv's W (in = 2*hidden, input = hidden+classes).
    N, F, R = 16, 8, 4          # nodes, num_features, n_rules
    H = 16                      # args.MLP_hidden
    C = 16                      # num_classes (== MLP_hidden)
    NNZ, NE = 32, 8             # incidence entries, hyperedges
    NLAYER = 2                  # args.All_num_layers

    key = jax.random.PRNGKey(0)
    ks = jax.random.split(key, 24)
    u = lambda k, shape: jax.random.uniform(k, shape, jnp.float32, 0.02, 0.05)

    params = dict(
        # TSK_input_fuzzifier (reset: normal(mean=1, std=0.2))
        Cs=1.0 + 0.2 * jax.random.normal(ks[0], (F, R), jnp.float32),
        Vs=1.0 + 0.2 * jax.random.normal(ks[1], (F, R), jnp.float32),
        # CrispToFuzzyConv (reset: uniform(0.02, 0.05))
        f1_wb=u(ks[2], (2 * F, H)), f1_wa=u(ks[3], (2 * F, H)), f1_wc=u(ks[4], (2 * F, H)),
        f1_bb=u(ks[5], (1, H)), f1_ba=u(ks[6], (1, H)), f1_bc=u(ks[7], (1, H)),
        # FuzzyEquivSetConv.W1 = FuzzyMLP(H -> C)
        w1_b=u(ks[8], (H, C)), w1_a=u(ks[9], (H, C)), w1_c=u(ks[10], (H, C)),
        b1_b=u(ks[11], (1, C)), b1_a=u(ks[12], (1, C)), b1_c=u(ks[13], (1, C)),
        # FuzzyEquivSetConv.W = FuzzyMLP(2H -> C)
        wW_b=u(ks[14], (2 * H, C)), wW_a=u(ks[15], (2 * H, C)), wW_c=u(ks[16], (2 * H, C)),
        bW_b=u(ks[17], (1, C)), bW_a=u(ks[18], (1, C)), bW_c=u(ks[19], (1, C)),
        # self.center (reset: normal(mean=0.5, std=0.1))
        center=0.5 + 0.1 * jax.random.normal(ks[20], (N, C), jnp.float32),
    )

    x = jax.random.normal(ks[21], (N, F), jnp.float32)
    V = jax.random.randint(ks[22], (NNZ,), 0, N, dtype=jnp.int32)   # edge_index[0]
    E = jnp.arange(NNZ, dtype=jnp.int32) % NE                       # edge_index[1]

    out = fhrli_forward(params, x, V, E, NE, NLAYER)
    out = jax.block_until_ready(out)

    ref = reference_forward(params, x, V, E, NE, NLAYER)
    max_err = float(jnp.max(jnp.abs(out - ref)))
    assert jnp.allclose(out, ref, rtol=1e-4, atol=1e-4), f"mismatch, max abs err = {max_err}"
    print("KERNEL_OK")
</pallas_src>

<mosaic_0001>
module attributes {stable_mosaic.version = 11 : i64} {
  func.func @_fuzzify_kernel(%arg0: i32, %arg1: memref<16x128xf32, #tpu.memory_space<vmem>>, %arg2: memref<8x128xf32, #tpu.memory_space<vmem>>, %arg3: memref<8x128xf32, #tpu.memory_space<vmem>>, %arg4: memref<16x128xf32, #tpu.memory_space<vmem>>) attributes {dimension_semantics = [#tpu.dimension_semantics<parallel>], iteration_bounds = array<i64: 1>, scalar_prefetch = 0 : i64, scratch_operands = 0 : i64, tpu.core_type = #tpu.core_type<tc>, window_params = [{transform_indices = @transform_0, window_bounds = array<i64: 16, 128>}, {pipeline_mode = #tpu.pipeline_mode<synchronous>, transform_indices = @transform_1, window_bounds = array<i64: 8, 128>}, {pipeline_mode = #tpu.pipeline_mode<synchronous>, transform_indices = @transform_2, window_bounds = array<i64: 8, 128>}, {transform_indices = @transform_3, window_bounds = array<i64: 16, 128>}]} {
    %c0 = arith.constant 0 : index
    %c0_0 = arith.constant 0 : index
    %0 = vector.load %arg1[%c0, %c0_0] : memref<16x128xf32, #tpu.memory_space<vmem>>, vector<16x128xf32>
    %c0_1 = arith.constant 0 : index
    %c0_2 = arith.constant 0 : index
    %1 = vector.load %arg2[%c0_1, %c0_2] : memref<8x128xf32, #tpu.memory_space<vmem>>, vector<8x128xf32>
    %c0_3 = arith.constant 0 : index
    %c0_4 = arith.constant 0 : index
    %2 = vector.load %arg3[%c0_3, %c0_4] : memref<8x128xf32, #tpu.memory_space<vmem>>, vector<8x128xf32>
    %3 = vector.extract_strided_slice %1 {offsets = [0, 0], sizes = [1, 128], strides = [1, 1]} : vector<8x128xf32> to vector<1x128xf32>
    %4 = vector.broadcast %3 : vector<1x128xf32> to vector<16x128xf32>
    %5 = arith.subf %0, %4 : vector<16x128xf32>
    %6 = arith.mulf %5, %5 : vector<16x128xf32>
    %cst = arith.constant 0.000000e+00 : f32
    %7 = vector.broadcast %cst : f32 to vector<16x128xf32>
    %8 = arith.subf %7, %6 : vector<16x128xf32>
    %9 = vector.extract_strided_slice %2 {offsets = [0, 0], sizes = [1, 128], strides = [1, 1]} : vector<8x128xf32> to vector<1x128xf32>
    %10 = vector.broadcast %9 : vector<1x128xf32> to vector<16x128xf32>
    %11 = arith.mulf %8, %10 : vector<16x128xf32>
    %12 = math.exp %11 : vector<16x128xf32>
    %13 = vector.extract_strided_slice %1 {offsets = [1, 0], sizes = [1, 128], strides = [1, 1]} : vector<8x128xf32> to vector<1x128xf32>
    %14 = vector.broadcast %13 : vector<1x128xf32> to vector<16x128xf32>
    %15 = arith.subf %0, %14 : vector<16x128xf32>
    %16 = arith.mulf %15, %15 : vector<16x128xf32>
    %cst_5 = arith.constant 0.000000e+00 : f32
    %17 = vector.broadcast %cst_5 : f32 to vector<16x128xf32>
    %18 = arith.subf %17, %16 : vector<16x128xf32>
    %19 = vector.extract_strided_slice %2 {offsets = [1, 0], sizes = [1, 128], strides = [1, 1]} : vector<8x128xf32> to vector<1x128xf32>
    %20 = vector.broadcast %19 : vector<1x128xf32> to vector<16x128xf32>
    %21 = arith.mulf %18, %20 : vector<16x128xf32>
    %22 = math.exp %21 : vector<16x128xf32>
    %23 = arith.maximumf %12, %22 : vector<16x128xf32>
    %24 = vector.extract_strided_slice %1 {offsets = [2, 0], sizes = [1, 128], strides = [1, 1]} : vector<8x128xf32> to vector<1x128xf32>
    %25 = vector.broadcast %24 : vector<1x128xf32> to vector<16x128xf32>
    %26 = arith.subf %0, %25 : vector<16x128xf32>
    %27 = arith.mulf %26, %26 : vector<16x128xf32>
    %cst_6 = arith.constant 0.000000e+00 : f32
    %28 = vector.broadcast %cst_6 : f32 to vector<16x128xf32>
    %29 = arith.subf %28, %27 : vector<16x128xf32>
    %30 = vector.extract_strided_slice %2 {offsets = [2, 0], sizes = [1, 128], strides = [1, 1]} : vector<8x128xf32> to vector<1x128xf32>
    %31 = vector.broadcast %30 : vector<1x128xf32> to vector<16x128xf32>
    %32 = arith.mulf %29, %31 : vector<16x128xf32>
    %33 = math.exp %32 : vector<16x128xf32>
    %34 = arith.maximumf %23, %33 : vector<16x128xf32>
    %35 = vector.extract_strided_slice %1 {offsets = [3, 0], sizes = [1, 128], strides = [1, 1]} : vector<8x128xf32> to vector<1x128xf32>
    %36 = vector.broadcast %35 : vector<1x128xf32> to vector<16x128xf32>
    %37 = arith.subf %0, %36 : vector<16x128xf32>
    %38 = arith.mulf %37, %37 : vector<16x128xf32>
    %cst_7 = arith.constant 0.000000e+00 : f32
    %39 = vector.broadcast %cst_7 : f32 to vector<16x128xf32>
    %40 = arith.subf %39, %38 : vector<16x128xf32>
    %41 = vector.extract_strided_slice %2 {offsets = [3, 0], sizes = [1, 128], strides = [1, 1]} : vector<8x128xf32> to vector<1x128xf32>
    %42 = vector.broadcast %41 : vector<1x128xf32> to vector<16x128xf32>
    %43 = arith.mulf %40, %42 : vector<16x128xf32>
    %44 = math.exp %43 : vector<16x128xf32>
    %45 = arith.maximumf %34, %44 : vector<16x128xf32>
    %46 = arith.mulf %0, %45 : vector<16x128xf32>
    %c0_8 = arith.constant 0 : index
    %c0_9 = arith.constant 0 : index
    %47 = vector.load %arg4[%c0_8, %c0_9] : memref<16x128xf32, #tpu.memory_space<vmem>>, vector<16x128xf32>
    tpu.vector_store %arg4[%c0_8, %c0_9], %46 {strides = array<i32>} : memref<16x128xf32, #tpu.memory_space<vmem>>, vector<16x128xf32>,
    return
  }
  func.func @transform_0(%arg0: i32) -> (i32, i32) {
    %c0_i32 = arith.constant 0 : i32
    %c0_i32_0 = arith.constant 0 : i32
    return %arg0, %c0_i32 : i32, i32
  }
  func.func @transform_1(%arg0: i32) -> (i32, i32) {
    %c0_i32 = arith.constant 0 : i32
    %c0_i32_0 = arith.constant 0 : i32
    %c0_i32_1 = arith.constant 0 : i32
    return %c0_i32, %c0_i32_0 : i32, i32
  }
  func.func @transform_2(%arg0: i32) -> (i32, i32) {
    %c0_i32 = arith.constant 0 : i32
    %c0_i32_0 = arith.constant 0 : i32
    %c0_i32_1 = arith.constant 0 : i32
    return %c0_i32, %c0_i32_0 : i32, i32
  }
  func.func @transform_3(%arg0: i32) -> (i32, i32) {
    %c0_i32 = arith.constant 0 : i32
    %c0_i32_0 = arith.constant 0 : i32
    return %arg0, %c0_i32 : i32, i32
  }
}

</mosaic_0001>

<bundles_post_ra>
// kernel: tpu_custom_call.1
= control target key start
LH: loop header
LB: loop body
LE: loop exit
PB: predicated region body
PF: predicated region fallthrough
CT: control target
= control target key end

     0   :  { %8 = vsyncpa [#allocation3], 0  ;;  %s330_s0 = inlined_call_operand.hbm [shape: f32[16,128], index: 0, kind: input, shape index: {}]   ;;  %s331_s1 = inlined_call_operand.hbm [shape: f32[8,128], index: 1, kind: input, shape index: {}]   ;;  %s332_s2 = inlined_call_operand.hbm [shape: f32[8,128], index: 2, kind: input, shape index: {}]   ;;  %s333_s3 = inlined_call_operand.hbm [shape: f32[16,128], index: 3, kind: output, shape index: {}]  }
   0x1   :  { %9 = vsyncpa [#allocation6], 0  ;;  %s29_s14 = sshll.u32 %s331_s1, 4  ;;  %s30_s14 = int_to_ptr.hbm [resolvable:$true] %s29_s14 }
   0x2   :  { %10 = vsyncpa [#allocation4], 0  ;;  %s272_s15 = smov [#allocation5]   ;;  %s15_s19 = sshll.u32 %s330_s0, 4  ;;  %s16_s19 = int_to_ptr.hbm [resolvable:$true] %s15_s19 }
   0x3   :  { %s31_s16 = sshll.u32 %s272_s15, 4  ;;  %s273_s20 = smov [#allocation2]   ;;  %s32_s16 = int_to_ptr.vmem [resolvable:$true] %s31_s16 }
   0x4   :  { %34 = dma.hbm_to_vmem [thread:$0]  %s30_s14, 128, %s32_s16, [#allocation6]  }
   0x5   :  { %s17_s21 = sshll.u32 %s273_s20, 4  ;;  %s274_s22 = smov 128   ;;  %s18_s21 = int_to_ptr.vmem [resolvable:$true] %s17_s21 }
   0x6   :  { %s275_s23 = smov 8   ;;  %s40_s25 = sshll.u32 %s332_s2, 4  ;;  %s41_s25 = int_to_ptr.hbm [resolvable:$true] %s40_s25 }
   0x7   :  { %23 = dma.hbm_to_vmem [thread:$0]  %s16_s19, 256, %s18_s21, [#allocation3], %s274_s22, %s274_s22, %s275_s23  }
   0x8   :  { %s276_s26 = smov [#allocation7]  }
   0x9   :  { %s42_s27 = sshll.u32 %s276_s26, 4  ;;  %s43_s27 = int_to_ptr.vmem [resolvable:$true] %s42_s27 }
   0xa   :  { %45 = dma.hbm_to_vmem [thread:$0]  %s41_s25, 128, %s43_s27, [#allocation6]  }
   0xb   :  { %266 = dma.done.wait [#allocation3], 256  }
   0xc   :  { %267 = vsyncadd [#allocation3], 4294967040 }
   0xd   :  { %268 = dma.done.wait [#allocation6], 256  }
   0xe   :  { %269 = vsyncadd [#allocation6], 4294967040  ;;  %v310_v0 = vld [vmem:[#allocation2] sm:$0xff]  ;;  %v60_v1 = vld [vmem:[#allocation5] sm:$0xff]  ;;  %s277_s0 = smov [#allocation8]   ;;  %s134_s30 = sshll.u32 %s333_s3, 4  ;;  %s135_s30 = int_to_ptr.hbm [resolvable:$true] %s134_s30 }
   0xf   :  { %v61_v2 = vld [vmem:[#allocation7] sm:$0xff]  ;;  %v62_v3 = vperm.slane %v60_v1, 0  ;;  %v76_v5 = vperm.slane %v60_v1, 1  ;;  %v312_v7 = vld [vmem:[#allocation2 + $0x8] sm:$0xff]  ;;  %v92_v8 = vperm.slane %v60_v1, 2  ;;  %v108_v10 = vperm.slane %v60_v1, 3 }
  0x10   :  { %v69_v4 = vperm.slane %v61_v2, 0  ;;  %v83_v6 = vperm.slane %v61_v2, 1  ;;  %v99_v9 = vperm.slane %v61_v2, 2  ;;  %v115_v11 = vperm.slane %v61_v2, 3  ;;  %s132_s2 = sshll.u32 %s277_s0, 4  ;;  %s133_s2 = int_to_ptr.vmem [resolvable:$true] %s132_s2 }
  0x11   :  { %v63_v12 = vsub.f32 %v310_v0, %v62_v3  ;;  %v77_v13 = vsub.f32 %v310_v0, %v76_v5  ;;  %v64_v14 = vsub.f32 %v312_v7, %v62_v3  ;;  %v78_v15 = vsub.f32 %v312_v7, %v76_v5 }
  0x12   :  { %v93_v16 = vsub.f32 %v310_v0, %v92_v8  ;;  %v109_v17 = vsub.f32 %v310_v0, %v108_v10  ;;  %v94_v18 = vsub.f32 %v312_v7, %v92_v8  ;;  %v110_v19 = vsub.f32 %v312_v7, %v108_v10 }
  0x13   :  { %v65_v20 = vmul.f32 %v63_v12, %v63_v12  ;;  %v79_v21 = vmul.f32 %v77_v13, %v77_v13  ;;  %v66_v22 = vmul.f32 %v64_v14, %v64_v14  ;;  %v80_v23 = vmul.f32 %v78_v15, %v78_v15 }
  0x14   :  { %v95_v24 = vmul.f32 %v93_v16, %v93_v16  ;;  %v111_v25 = vmul.f32 %v109_v17, %v109_v17  ;;  %v96_v26 = vmul.f32 %v94_v18, %v94_v18  ;;  %v112_v27 = vmul.f32 %v110_v19, %v110_v19 }
  0x15   :  { %v67_v28 = vsub.f32 0.0, %v65_v20  ;;  %v81_v29 = vsub.f32 0.0, %v79_v21  ;;  %v68_v30 = vsub.f32 0.0, %v66_v22  ;;  %v82_v31 = vsub.f32 0.0, %v80_v23 }
  0x16   :  { %v97_v32 = vsub.f32 0.0, %v95_v24  ;;  %v113_v33 = vsub.f32 0.0, %v111_v25  ;;  %v98_v34 = vsub.f32 0.0, %v96_v26  ;;  %v114_v35 = vsub.f32 0.0, %v112_v27 }
  0x17   :  { %v70_v36 = vmul.f32 %v69_v4, %v67_v28  ;;  %v84_v37 = vmul.f32 %v83_v6, %v81_v29  ;;  %v71_v38 = vmul.f32 %v69_v4, %v68_v30  ;;  %v85_v41 = vmul.f32 %v83_v6, %v82_v31 }
  0x18   :  { %v100_v39 = vmul.f32 %v99_v9, %v97_v32  ;;  %v116_v40 = vmul.f32 %v115_v11, %v113_v33  ;;  %v101_v44 = vmul.f32 %v99_v9, %v98_v34  ;;  %v117_v47 = vmul.f32 %v115_v11, %v114_v35 }
  0x19   :  { %v72_v42 = vmul.f32 1.442695, %v70_v36  ;;  %v86_v43 = vmul.f32 1.442695, %v84_v37  ;;  %v74_v48 = vmul.f32 1.442695, %v71_v38 }
  0x1a   :  { %v102_v45 = vmul.f32 1.442695, %v100_v39  ;;  %v118_v46 = vmul.f32 1.442695, %v116_v40  ;;  %v88_v49 = vmul.f32 1.442695, %v85_v41 }
  0x1b   :  { %154 = vpow2.f32 %v72_v42  ;;  %v104_v50 = vmul.f32 1.442695, %v101_v44  ;;  %v120_v51 = vmul.f32 1.442695, %v117_v47 }
  0x1c   :  { %156 = vpow2.f32 %v86_v43 }
  0x1d   :  { %158 = vpow2.f32 %v102_v45 }
  0x1e   :  { %160 = vpow2.f32 %v118_v46 }
  0x1f   :  { %162 = vpow2.f32 %v74_v48 }
  0x20   :  { %164 = vpow2.f32 %v88_v49 }
  0x21   :  { %v155_v52 = vpop.eup %154  ;;  %166 = vpow2.f32 %v104_v50 }
  0x22   :  { %v157_v53 = vpop.eup %156  ;;  %168 = vpow2.f32 %v120_v51 }
  0x23   :  { %v159_v54 = vpop.eup %158  ;;  %v90_v55 = vmax.f32 %v155_v52, %v157_v53 }
  0x24   :  { %v161_v56 = vpop.eup %160 }
  0x25   :  { %v163_v57 = vpop.eup %162  ;;  %v106_v58 = vmax.f32 %v90_v55, %v159_v54 }
  0x26   :  { %v165_v59 = vpop.eup %164 }
  0x27   :  { %v167_v60 = vpop.eup %166  ;;  %v122_v61 = vmax.f32 %v106_v58, %v161_v56  ;;  %v91_v62 = vmax.f32 %v163_v57, %v165_v59 }
  0x28   :  { %v169_v63 = vpop.eup %168 }
  0x29   :  { %v124_v1 = vmul.f32 %v122_v61, %v310_v0  ;;  %v107_v2 = vmax.f32 %v91_v62, %v167_v60 }
  0x2b   :  { %126 = vst [vmem:[#allocation8] sm:$0xff] %v124_v1  ;;  %v123_v3 = vmax.f32 %v107_v2, %v169_v63 }
  0x2d   :  { %v125_v4 = vmul.f32 %v123_v3, %v312_v7 }
  0x2f   :  { %127 = vst [vmem:[#allocation8 + $0x8] sm:$0xff] %v125_v4 }
  0x30   :  { %140 = dma.vmem_to_hbm [thread:$0]  %s133_s2, 256, %s135_s30, [#allocation4], %s274_s22, %s274_s22, %s275_s23  }
  0x31   :  { %270 = dma.done.wait [#allocation4], 256  }
  0x32   :  { %271 = vsyncadd [#allocation4], 4294967040 }
  0x33   :  { %145 = vsyncpa [#allocation3], 1 }
  0x34   :  { %146 = vsyncpa [#allocation6], 1 }
  0x35   :  { %147 = vsyncpa [#allocation4], 1 }

</bundles_post_ra>
